<compile_context>
chip_gen: v6e
topology: v6e:2x2x1
jax: 0.10.0
libtpu: 0.0.40
codegen_flags: <defaults>
</compile_context>

<pallas_src>
import jax
import jax.numpy as jnp
from jax.experimental import pallas as pl
from jax.experimental.pallas import tpu as pltpu


def _round_up(x, m):
    return ((x + m - 1) // m) * m


# ----------------------------------------------------------------------------
# Kernel: one tile of edges.
#   s = leaky_relu(h_cat @ W1 + b1)        (h_cat = cat[h_u, h_v], bf16 dot)
#   s = leaky_relu(s @ W2 + b2)            (bf16 dot, f32 accumulate)
#   o = s @ W3 + b3                        (narrow out_classes-wide store)
# ----------------------------------------------------------------------------
def edge_mlp_kernel(hcat_ref, w1_ref, b1_ref, w2_ref, b2_ref, w3_ref, b3_ref,
                    o_ref):
    def leaky(x):
        return jnp.where(x > 0, x, 0.01 * x)

    # layer 1: bf16 operands, f32 accumulation; bias add / activation in f32.
    s = jnp.dot(hcat_ref[...], w1_ref[...],
                preferred_element_type=jnp.float32) + b1_ref[...]
    s = leaky(s)
    # layer 2
    s = jnp.dot(s.astype(jnp.bfloat16), w2_ref[...],
                preferred_element_type=jnp.float32) + b2_ref[...]
    s = leaky(s)
    # layer 3: store only the real out_classes columns (no lane padding).
    o_ref[...] = jnp.dot(s.astype(jnp.bfloat16), w3_ref[...],
                         preferred_element_type=jnp.float32) + b3_ref[...]


# ----------------------------------------------------------------------------
# Wrapper: pad the edge indices, gather the concatenated per-edge embeddings
# (single XLA gather), run the tiled pallas_call, slice padded rows away.
# ----------------------------------------------------------------------------
def mlp_predictor(h, src, dst, params, *, out_classes, softmax=False,
                  tile_e=2048):
    f = h.shape[1]
    e = src.shape[0]
    c = out_classes

    # tile size: multiple of 8 sublanes, no bigger than needed for tiny E.
    tile_e = min(tile_e, _round_up(max(e, 8), 8))
    # v7x megacore: make sure the parallel grid has >= 2 steps when E allows,
    # so both TensorCores get work (no-op loss on v5e/v6e single-TC chips).
    if e > 8 and pl.cdiv(e, tile_e) < 2:
        tile_e = _round_up(pl.cdiv(e, 2), 8)
    assert tile_e % 8 == 0

    # pad the int32 index arrays (cheap) instead of the gathered activations.
    e_pad = pl.cdiv(e, tile_e) * tile_e
    if e_pad != e:
        pad = e_pad - e
        src = jnp.pad(src, (0, pad))
        dst = jnp.pad(dst, (0, pad))

    # single gather for cat[h_u, h_v]: (e_pad, 2, f) -> (e_pad, 2f), bf16.
    h_bf = h.astype(jnp.bfloat16)
    h_cat = h_bf[jnp.stack([src, dst], axis=1)].reshape(e_pad, 2 * f)

    # weights in bf16 (MXU operands), biases in f32 (accumulator precision).
    w1 = params["w1"].astype(jnp.bfloat16)            # (2f, 256)
    w2 = params["w2"].astype(jnp.bfloat16)            # (256, 128)
    w3 = params["w3"].astype(jnp.bfloat16)            # (128, c)
    b1 = params["b1"].astype(jnp.float32).reshape(1, -1)   # (1, 256)
    b2 = params["b2"].astype(jnp.float32).reshape(1, -1)   # (1, 128)
    b3 = params["b3"].astype(jnp.float32).reshape(1, -1)   # (1, c)

    f2 = 2 * f
    h1 = w1.shape[1]   # 256
    h2 = w2.shape[1]   # 128

    grid = (e_pad // tile_e,)
    out = pl.pallas_call(
        edge_mlp_kernel,
        out_shape=jax.ShapeDtypeStruct((e_pad, c), jnp.float32),
        grid_spec=pltpu.PrefetchScalarGridSpec(
            num_scalar_prefetch=0,
            grid=grid,
            in_specs=[
                # streamed per-tile activations
                pl.BlockSpec((tile_e, f2), lambda i: (i, 0)),
                # weights / biases resident across the grid (constant index)
                pl.BlockSpec((f2, h1), lambda i: (0, 0)),
                pl.BlockSpec((1, h1), lambda i: (0, 0)),
                pl.BlockSpec((h1, h2), lambda i: (0, 0)),
                pl.BlockSpec((1, h2), lambda i: (0, 0)),
                pl.BlockSpec((h2, c), lambda i: (0, 0)),
                pl.BlockSpec((1, c), lambda i: (0, 0)),
            ],
            out_specs=pl.BlockSpec((tile_e, c), lambda i: (i, 0)),
        ),
        compiler_params=pltpu.CompilerParams(
            dimension_semantics=("parallel",),
        ),
    )(h_cat, w1, b1, w2, b2, w3, b3)

    score = out[:e]
    if softmax:
        # TODO(synk): could be fused in-kernel (would need padded-row masking);
        # kept in the wrapper since softmax=False is the module default.
        score = jax.nn.softmax(score, axis=1)
    return score


# ----------------------------------------------------------------------------
# Pure-JAX reference (mirrors the PyTorch forward exactly, in f32).
# ----------------------------------------------------------------------------
def mlp_predictor_ref(h, src, dst, params, *, out_classes, softmax=False):
    def leaky(x):
        return jnp.where(x > 0, x, 0.01 * x)

    hcat = jnp.concatenate([h[src], h[dst]], axis=1)
    s = leaky(hcat @ params["w1"] + params["b1"])
    s = leaky(s @ params["w2"] + params["b2"])
    s = s @ params["w3"] + params["b3"]
    if softmax:
        s = jax.nn.softmax(s, axis=1)
    return s


def init_params(key, in_features, out_classes):
    ks = jax.random.split(key, 6)

    def lin(kw, kb, fan_in, fan_out):
        # PyTorch nn.Linear default init: U(-1/sqrt(fan_in), 1/sqrt(fan_in))
        scale = 1.0 / jnp.sqrt(jnp.float32(fan_in))
        w = jax.random.uniform(kw, (fan_in, fan_out), jnp.float32,
                               minval=-scale, maxval=scale)
        b = jax.random.uniform(kb, (fan_out,), jnp.float32,
                               minval=-scale, maxval=scale)
        return w, b

    w1, b1 = lin(ks[0], ks[1], in_features * 2, 256)
    w2, b2 = lin(ks[2], ks[3], 256, 128)
    w3, b3 = lin(ks[4], ks[5], 128, out_classes)
    return dict(w1=w1, b1=b1, w2=w2, b2=b2, w3=w3, b3=b3)


if __name__ == "__main__":
    key = jax.random.PRNGKey(0)
    k_h, k_s, k_d, k_p = jax.random.split(key, 4)

    # small synthetic graph: N nodes, E edges (E not a tile multiple on purpose)
    N = 32
    E = 200
    IN_F = 16
    OUT_C = 4

    h = jax.random.normal(k_h, (N, IN_F), jnp.float32)
    src = jax.random.randint(k_s, (E,), 0, N, dtype=jnp.int32)
    dst = jax.random.randint(k_d, (E,), 0, N, dtype=jnp.int32)
    params = init_params(k_p, IN_F, OUT_C)

    score = mlp_predictor(h, src, dst, params, out_classes=OUT_C,
                          softmax=False)
    jax.block_until_ready(score)

    ref = mlp_predictor_ref(h, src, dst, params, out_classes=OUT_C,
                            softmax=False)

    assert score.shape == (E, OUT_C)
    assert jnp.all(jnp.isfinite(score))
    # tolerance loosened: kernel runs the matmuls in bf16 with f32 accumulation
    assert jnp.allclose(score, ref, rtol=5e-2, atol=5e-2), (
        float(jnp.max(jnp.abs(score - ref))))
    print("KERNEL_OK")
</pallas_src>

<mosaic_0001>
module attributes {stable_mosaic.version = 11 : i64} {
  func.func @edge_mlp_kernel(%arg0: i32, %arg1: memref<104x32xbf16, #tpu.memory_space<vmem>>, %arg2: memref<32x256xbf16, #tpu.memory_space<vmem>>, %arg3: memref<1x256xf32, #tpu.memory_space<vmem>>, %arg4: memref<256x128xbf16, #tpu.memory_space<vmem>>, %arg5: memref<1x128xf32, #tpu.memory_space<vmem>>, %arg6: memref<128x4xbf16, #tpu.memory_space<vmem>>, %arg7: memref<1x4xf32, #tpu.memory_space<vmem>>, %arg8: memref<104x4xf32, #tpu.memory_space<vmem>>) attributes {dimension_semantics = [#tpu.dimension_semantics<parallel>], iteration_bounds = array<i64: 2>, scalar_prefetch = 0 : i64, scratch_operands = 0 : i64, tpu.core_type = #tpu.core_type<tc>, window_params = [{transform_indices = @transform_0, window_bounds = array<i64: 104, 32>}, {pipeline_mode = #tpu.pipeline_mode<synchronous>, transform_indices = @transform_1, window_bounds = array<i64: 32, 256>}, {pipeline_mode = #tpu.pipeline_mode<synchronous>, transform_indices = @transform_2, window_bounds = array<i64: 1, 256>}, {pipeline_mode = #tpu.pipeline_mode<synchronous>, transform_indices = @transform_3, window_bounds = array<i64: 256, 128>}, {pipeline_mode = #tpu.pipeline_mode<synchronous>, transform_indices = @transform_4, window_bounds = array<i64: 1, 128>}, {pipeline_mode = #tpu.pipeline_mode<synchronous>, transform_indices = @transform_5, window_bounds = array<i64: 128, 4>}, {pipeline_mode = #tpu.pipeline_mode<synchronous>, transform_indices = @transform_6, window_bounds = array<i64: 1, 4>}, {transform_indices = @transform_7, window_bounds = array<i64: 104, 4>}]} {
    %c0 = arith.constant 0 : index
    %c0_0 = arith.constant 0 : index
    %0 = vector.load %arg1[%c0, %c0_0] : memref<104x32xbf16, #tpu.memory_space<vmem>>, vector<104x32xbf16>
    %c0_1 = arith.constant 0 : index
    %c0_2 = arith.constant 0 : index
    %1 = vector.load %arg2[%c0_1, %c0_2] : memref<32x256xbf16, #tpu.memory_space<vmem>>, vector<32x256xbf16>
    %cst = arith.constant dense<0.000000e+00> : vector<104x256xf32>
    %2 = tpu.matmul %0, %1, %cst {dimension_numbers = #tpu.dot_dimension_numbers<[1], [0], [0], [1], [0, 0, 1, 1], [], []>} : vector<104x32xbf16>, vector<32x256xbf16>, vector<104x256xf32> -> vector<104x256xf32>
    %c0_3 = arith.constant 0 : index
    %c0_4 = arith.constant 0 : index
    %3 = vector.load %arg3[%c0_3, %c0_4] : memref<1x256xf32, #tpu.memory_space<vmem>>, vector<1x256xf32>
    %4 = vector.broadcast %3 : vector<1x256xf32> to vector<104x256xf32>
    %5 = arith.addf %2, %4 : vector<104x256xf32>
    %cst_5 = arith.constant 0.000000e+00 : f32
    %6 = vector.broadcast %cst_5 : f32 to vector<104x256xf32>
    %7 = arith.cmpf ogt, %5, %6 : vector<104x256xf32>
    %cst_6 = arith.constant 0.00999999977 : f32
    %8 = vector.broadcast %cst_6 : f32 to vector<104x256xf32>
    %9 = arith.mulf %8, %5 : vector<104x256xf32>
    %10 = arith.select %7, %5, %9 : vector<104x256xi1>, vector<104x256xf32>
    %11 = arith.truncf %10 : vector<104x256xf32> to vector<104x256xbf16>
    %c0_7 = arith.constant 0 : index
    %c0_8 = arith.constant 0 : index
    %12 = vector.load %arg4[%c0_7, %c0_8] : memref<256x128xbf16, #tpu.memory_space<vmem>>, vector<256x128xbf16>
    %cst_9 = arith.constant dense<0.000000e+00> : vector<104x128xf32>
    %13 = tpu.matmul %11, %12, %cst_9 {dimension_numbers = #tpu.dot_dimension_numbers<[1], [0], [0], [1], [0, 0, 1, 1], [], []>} : vector<104x256xbf16>, vector<256x128xbf16>, vector<104x128xf32> -> vector<104x128xf32>
    %c0_10 = arith.constant 0 : index
    %c0_11 = arith.constant 0 : index
    %14 = vector.load %arg5[%c0_10, %c0_11] : memref<1x128xf32, #tpu.memory_space<vmem>>, vector<1x128xf32>
    %15 = vector.broadcast %14 : vector<1x128xf32> to vector<104x128xf32>
    %16 = arith.addf %13, %15 : vector<104x128xf32>
    %cst_12 = arith.constant 0.000000e+00 : f32
    %17 = vector.broadcast %cst_12 : f32 to vector<104x128xf32>
    %18 = arith.cmpf ogt, %16, %17 : vector<104x128xf32>
    %cst_13 = arith.constant 0.00999999977 : f32
    %19 = vector.broadcast %cst_13 : f32 to vector<104x128xf32>
    %20 = arith.mulf %19, %16 : vector<104x128xf32>
    %21 = arith.select %18, %16, %20 : vector<104x128xi1>, vector<104x128xf32>
    %22 = arith.truncf %21 : vector<104x128xf32> to vector<104x128xbf16>
    %c0_14 = arith.constant 0 : index
    %c0_15 = arith.constant 0 : index
    %23 = vector.load %arg6[%c0_14, %c0_15] : memref<128x4xbf16, #tpu.memory_space<vmem>>, vector<128x4xbf16>
    %cst_16 = arith.constant dense<0.000000e+00> : vector<104x4xf32>
    %24 = tpu.matmul %22, %23, %cst_16 {dimension_numbers = #tpu.dot_dimension_numbers<[1], [0], [0], [1], [0, 0, 1, 1], [], []>} : vector<104x128xbf16>, vector<128x4xbf16>, vector<104x4xf32> -> vector<104x4xf32>
    %c0_17 = arith.constant 0 : index
    %c0_18 = arith.constant 0 : index
    %25 = vector.load %arg7[%c0_17, %c0_18] : memref<1x4xf32, #tpu.memory_space<vmem>>, vector<1x4xf32>
    %26 = vector.broadcast %25 : vector<1x4xf32> to vector<104x4xf32>
    %27 = arith.addf %24, %26 : vector<104x4xf32>
    %c0_19 = arith.constant 0 : index
    %c0_20 = arith.constant 0 : index
    %28 = vector.load %arg8[%c0_19, %c0_20] : memref<104x4xf32, #tpu.memory_space<vmem>>, vector<104x4xf32>
    tpu.vector_store %arg8[%c0_19, %c0_20], %27 {strides = array<i32>} : memref<104x4xf32, #tpu.memory_space<vmem>>, vector<104x4xf32>,
    return
  }
  func.func @transform_0(%arg0: i32) -> (i32, i32) {
    %c0_i32 = arith.constant 0 : i32
    %c0_i32_0 = arith.constant 0 : i32
    return %arg0, %c0_i32 : i32, i32
  }
  func.func @transform_1(%arg0: i32) -> (i32, i32) {
    %c0_i32 = arith.constant 0 : i32
    %c0_i32_0 = arith.constant 0 : i32
    %c0_i32_1 = arith.constant 0 : i32
    return %c0_i32, %c0_i32_0 : i32, i32
  }
  func.func @transform_2(%arg0: i32) -> (i32, i32) {
    %c0_i32 = arith.constant 0 : i32
    %c0_i32_0 = arith.constant 0 : i32
    %c0_i32_1 = arith.constant 0 : i32
    return %c0_i32, %c0_i32_0 : i32, i32
  }
  func.func @transform_3(%arg0: i32) -> (i32, i32) {
    %c0_i32 = arith.constant 0 : i32
    %c0_i32_0 = arith.constant 0 : i32
    %c0_i32_1 = arith.constant 0 : i32
    return %c0_i32, %c0_i32_0 : i32, i32
  }
  func.func @transform_4(%arg0: i32) -> (i32, i32) {
    %c0_i32 = arith.constant 0 : i32
    %c0_i32_0 = arith.constant 0 : i32
    %c0_i32_1 = arith.constant 0 : i32
    return %c0_i32, %c0_i32_0 : i32, i32
  }
  func.func @transform_5(%arg0: i32) -> (i32, i32) {
    %c0_i32 = arith.constant 0 : i32
    %c0_i32_0 = arith.constant 0 : i32
    %c0_i32_1 = arith.constant 0 : i32
    return %c0_i32, %c0_i32_0 : i32, i32
  }
  func.func @transform_6(%arg0: i32) -> (i32, i32) {
    %c0_i32 = arith.constant 0 : i32
    %c0_i32_0 = arith.constant 0 : i32
    %c0_i32_1 = arith.constant 0 : i32
    return %c0_i32, %c0_i32_0 : i32, i32
  }
  func.func @transform_7(%arg0: i32) -> (i32, i32) {
    %c0_i32 = arith.constant 0 : i32
    %c0_i32_0 = arith.constant 0 : i32
    return %arg0, %c0_i32 : i32, i32
  }
}

</mosaic_0001>

<bundles_post_ra>
// kernel: tpu_custom_call.1
= control target key start
LH: loop header
LB: loop body
LE: loop exit
PB: predicated region body
PF: predicated region fallthrough
CT: control target
= control target key end

     0   :  { %s1351_s24 = smov 0   ;;  %s1601_s0 = inlined_call_operand.vmem [shape: bf16[208,32], index: 0, kind: input, shape index: {}]   ;;  %s1602_s1 = inlined_call_operand.vmem [shape: bf16[32,256], index: 1, kind: input, shape index: {}]   ;;  %s1603_s2 = inlined_call_operand.vmem [shape: f32[1,256], index: 2, kind: input, shape index: {}]   ;;  %s1604_s3 = inlined_call_operand.vmem [shape: bf16[256,128], index: 3, kind: input, shape index: {}]   ;;  %s1605_s4 = inlined_call_operand.vmem [shape: f32[1,128], index: 4, kind: input, shape index: {}]   ;;  %s1606_s5 = inlined_call_operand.vmem [shape: bf16[128,4], index: 5, kind: input, shape index: {}]   ;;  %s1607_s6 = inlined_call_operand.vmem [shape: f32[1,4], index: 6, kind: input, shape index: {}]   ;;  %s1608_s7 = inlined_call_operand.vmem [shape: f32[208,4], index: 7, kind: output, shape index: {}]  }
   0x1 LB: > { %s1078_s25 = sadd.s32 4294967295, %s1306_s24   ;;  %p1082_p0 = scmp.ge.s32.totalorder %s1306_s24, 1  ;;  %s1306_s24 = sphi %s1351_s24, %s17_s24  }
   0x2   : > { %p238_p1 = scmp.lt.s32.totalorder %s1306_s24, 3 }
   0x4   : > { %p239_p2 = pnand %p1082_p0, %p238_p1 }
   0x5   : > { %s270_s28 = smul.u32 (!%p239_p2), 13, %s1078_s25 }
   0x6   : > { %242 = sbr.rel (%p239_p2) target bundleno = 683 (0x2ab), region = 48 }
   0x7   : > { %p271_p3 = scmp.lt.s32.totalorder (!%p239_p2), %s270_s28, 25 }
   0xb   : > { %v1263_v0 = vld [vmem:[%s1602_s1 + $0x14] ss:$8 sps:$4 sm:$0xff]   ;;  %v1265_v1 = vld [vmem:[%s1602_s1 + $0x10] ss:$8 sps:$4 sm:$0xff]   ;;  %v1308_v2 = vmov 0   ;;  %s1610_s28 = smov (!%p271_p3, %s270_s28), 25  ;;  %v302_v33 = vlaneseq }
   0xc   : > { %419 = vmatprep.mubr.bf16.mxu0 %v1308_v2  ;;  %459 = vmatprep.mubr.bf16.mxu1 %v1308_v2  ;;  %v1266_v3 = vld [vmem:[%s1602_s1 + $0x4] ss:$8 sps:$4 sm:$0xff]   ;;  %v1268_v4 = vld [vmem:[%s1602_s1] ss:$8 sps:$4 sm:$0xff]   ;;  %v1276_v5 = vld [vmem:[%s1604_s3 + $0x78] sm:$0xff]   ;;  %s1083_s14 = sshll.u32 %s1610_s28, 2 }
   0xd   : > { %399 = vmatprep.subr.bf16.mxu0 %v1263_v0  ;;  %1248 = vmatprep.subr.bf16.mxu1 %v1263_v0  ;;  %s1380_s17 = scalar_lea.vmem %s1601_s0, %s1083_s14  ;;  %vm365_vm0 = vcmask 261120   ;;  %v1277_v7 = vld [vmem:[%s1604_s3 + $0x38] sm:$0xff]   ;;  %v1278_v8 = vld [vmem:[%s1604_s3 + $0x70] sm:$0xff]   ;;  %v1280_v12 = vld [vmem:[%s1604_s3 + $0x68] sm:$0xff]   ;;  %v1309_v29 = vmov 0.0   ;;  %v303_v34 = vshrl.u32 %v302_v33, 7 }
   0xe   : > { %400 = vmatpush1.bf16.msra.mxu0 %v1265_v1  ;;  %1250 = vmatpush1.bf16.msra.mxu1 %v1265_v1  ;;  %v1269_v6 = vld [vmem:[%s1380_s17] sm:$0xff]   ;;  %v1270_v10 = vld [vmem:[%s1380_s17 + $0x8] sm:$0xff]   ;;  %v1279_v11 = vld [vmem:[%s1604_s3 + $0x30] sm:$0xff]   ;;  %s1084_s27 = sshll.u32 %s1610_s28, 3 }
   0xf   : > { %401 = vmatprep.subr.bf16.mxu0 %v1266_v3  ;;  %1249 = vmatprep.subr.bf16.mxu1 %v1266_v3  ;;  %v1273_v9 = vld [vmem:[%s1380_s17 + $0x20] sm:$0xff]   ;;  %v1274_v13 = vld [vmem:[%s1380_s17 + $0x28] sm:$0xff]   ;;  %v1271_v16 = vld [vmem:[%s1380_s17 + $0x10] sm:$0xff]   ;;  %v308_v35 = vsub.s32 1, %v303_v34  ;;  %v304_v36 = vsub.s32 0, %v303_v34  ;;  %s1570_s10 = scalar_lea.vmem %s1608_s7, %s1084_s27 }
  0x10   : > { %v1281_v14 = vld [vmem:[%s1604_s3 + $0x28] sm:$0xff]   ;;  %v1282_v15 = vld [vmem:[%s1604_s3 + $0x60] sm:$0xff]   ;;  %v1284_v18 = vld [vmem:[%s1604_s3 + $0x58] sm:$0xff]  }
  0x11   : > { %v1283_v17 = vld [vmem:[%s1604_s3 + $0x20] sm:$0xff]   ;;  %v1275_v19 = vld [vmem:[%s1380_s17 + $0x30] ss:$0 sps:$4 sm:$0xff]   ;;  %v1272_v20 = vld [vmem:[%s1380_s17 + $0x18] sm:$0xff]  }
  0x12   : > { %402 = vmatpush1.bf16.msra.mxu0 %v1268_v4  ;;  %1251 = vmatpush1.bf16.msra.mxu1 %v1268_v4  ;;  %v1285_v21 = vld [vmem:[%s1604_s3 + $0x18] sm:$0xff]   ;;  %v1286_v22 = vld [vmem:[%s1604_s3 + $0x50] sm:$0xff]   ;;  %v1288_v24 = vld [vmem:[%s1604_s3 + $0x48] sm:$0xff]  }
  0x13   : > { %1131 = vmatprep.subr.bf16.mxu1 %v1276_v5  ;;  %v1287_v23 = vld [vmem:[%s1604_s3 + $0x10] sm:$0xff]   ;;  %v1289_v25 = vld [vmem:[%s1604_s3 + $0x8] sm:$0xff]   ;;  %v1290_v26 = vld [vmem:[%s1604_s3 + $0x40] sm:$0xff]   ;;  %1204 = vmatprep.subr.bf16.mxu0 %v1309_v29 }
  0x14   : > { %v1291_v27 = vld [vmem:[%s1604_s3] sm:$0xff]   ;;  %v1292_v28 = vld [vmem:[%s1606_s5 + $0x38] sm:$0xff]   ;;  %v1293_v30 = vld [vmem:[%s1606_s5 + $0x30] sm:$0xff]  }
  0x15   : > { %1096 = vmatmul.mubr.msk.bf16.vlgmr.msra.gmra.mxu0 %vm365_vm0, %v1269_v6  ;;  %1100 = vmatmul.mubr.msk.bf16.vlgmr.msra.gmra.mxu1 %vm365_vm0, %v1273_v9  ;;  %v1294_v31 = vld [vmem:[%s1606_s5 + $0x28] sm:$0xff]   ;;  %v1295_v32 = vld [vmem:[%s1606_s5 + $0x20] sm:$0xff]  }
  0x16   : > { %429 = vmatprep.mubr.bf16.mxu0 %v1308_v2  ;;  %469 = vmatprep.mubr.bf16.mxu1 %v1308_v2  ;;  %v300_v37 = vld [vmem:[%s1603_s2] sm:$0x3] }
  0x17   : > { %1132 = vmatpush3.bf16.msra.mxu1 %v1277_v7  ;;  %1205 = vmatpush3.bf16.msra.mxu0 %v1292_v28  ;;  %v1461_v38 = vrot.slane %v300_v37, %v308_v35  ;;  %v1463_v39 = vrot.slane %v300_v37, %v304_v36 }
  0x18   : > { %1133 = vmatprep.subr.bf16.mxu1 %v1278_v8  ;;  %1206 = vmatprep.subr.bf16.mxu0 %v1309_v29 }
  0x1b   : > { %1134 = vmatpush3.bf16.msra.mxu1 %v1279_v11  ;;  %1207 = vmatpush3.bf16.msra.mxu0 %v1293_v30 }
  0x1c   : > { %1135 = vmatprep.subr.bf16.mxu1 %v1280_v12  ;;  %1208 = vmatprep.subr.bf16.mxu0 %v1309_v29 }
  0x1d   : > { %1097 = vmatmul.mubr.msk.bf16.gmra.mxu0 %vm365_vm0, %v1270_v10  ;;  %1101 = vmatmul.mubr.msk.bf16.gmra.mxu1 %vm365_vm0, %v1274_v13 }
  0x1e   : > { %439 = vmatprep.mubr.bf16.mxu0 %v1308_v2  ;;  %479 = vmatprep.mubr.bf16.mxu1 %v1308_v2 }
  0x1f   : > { %1136 = vmatpush3.bf16.msra.mxu1 %v1281_v14  ;;  %1209 = vmatpush3.bf16.msra.mxu0 %v1294_v31 }
  0x20   : > { %1137 = vmatprep.subr.bf16.mxu1 %v1282_v15  ;;  %1210 = vmatprep.subr.bf16.mxu0 %v1309_v29 }
  0x23   : > { %1138 = vmatpush3.bf16.msra.mxu1 %v1283_v17  ;;  %1211 = vmatpush3.bf16.msra.mxu0 %v1295_v32 }
  0x24   : > { %1139 = vmatprep.subr.bf16.mxu1 %v1284_v18  ;;  %1212 = vmatprep.subr.bf16.mxu0 %v1309_v29 }
  0x25   : > { %1098 = vmatmul.mubr.msk.bf16.gmra.mxu0 %vm365_vm0, %v1271_v16  ;;  %1102 = vmatmul.mubr.msk.bf16.gmra.mxu1 %vm365_vm0, %v1275_v19 }
  0x26   : > { %449 = vmatprep.mubr.bf16.mxu0 %v1308_v2 }
  0x27   : > { %1140 = vmatpush3.bf16.msra.mxu1 %v1285_v21 }
  0x28   : > { %1141 = vmatprep.subr.bf16.mxu1 %v1286_v22 }
  0x2b   : > { %1142 = vmatpush3.bf16.msra.mxu1 %v1287_v23 }
  0x2c   : > { %1143 = vmatprep.subr.bf16.mxu1 %v1288_v24 }
  0x2d   : > { %1099 = vmatmul.mubr.msk.bf16.gmra.mxu0 %vm365_vm0, %v1272_v20 }
  0x2f   : > { %1144 = vmatpush3.bf16.msra.mxu1 %v1289_v25 }
  0x30   : > { %1145 = vmatprep.subr.bf16.mxu1 %v1290_v26 }
  0x33   : > { %1146 = vmatpush3.bf16.msra.mxu1 %v1291_v27 }
  0xd5   : > { %v421_v40 = vpop.f32.mrf.mxu0  ;;  %v1467_v45 = vpop.f32.mrf.mxu1 }
  0xd6   : > { %v422_v43 = vadd.f32 %v421_v40, %v1463_v39 }
  0xd7   : > { %v423_v41 = vpop.f32.mrf.mxu0  ;;  %v1470_v48 = vpop.f32.mrf.mxu1 }
  0xd8   : > { %v424_v42 = vadd.f32 %v423_v41, %v1461_v38  ;;  %v514_v52 = vmul.f32 0.01, %v422_v43  ;;  %vm488_vm3 = vcmp.gt.f32.partialorder %v422_v43, 0.0  ;;  %v464_v40 = vadd.f32 %v1470_v48, %v1461_v38 }
  0xd9   : > { %v425_v44 = vpop.f32.mrf.mxu0  ;;  %v1473_v54 = vpop.f32.mrf.mxu1 }
  0xda   : > { %v426_v46 = vadd.f32 %v425_v44, %v1463_v39  ;;  %v515_v49 = vmul.f32 0.01, %v424_v42  ;;  %vm489_vm2 = vcmp.gt.f32.partialorder %v424_v42, 0.0  ;;  %v540_v62 = vsel %vm488_vm3, %v422_v43, %v514_v52 }
  0xdb   : > { %v427_v47 = vpop.f32.mrf.mxu0  ;;  %v467_v58 = vpop.f32.mrf.mxu1  ;;  %vm505_vm13 = vcmp.gt.f32.partialorder %v464_v40, 0.0 }
  0xdc   : > { %vm490_vm1 = vcmp.gt.f32.partialorder %v426_v46, 0.0  ;;  %v516_v50 = vmul.f32 0.01, %v426_v46  ;;  %v428_v51 = vadd.f32 %v427_v47, %v1461_v38  ;;  %v541_v60 = vsel %vm489_vm2, %v424_v42, %v515_v49 }
  0xdd   : > { %v431_v53 = vpop.f32.mrf.mxu0  ;;  %v1477_v2 = vpop.f32.mrf.mxu1  ;;  %v468_v41 = vadd.f32 %v467_v58, %v1461_v38 }
  0xde   : > { %vm491_vm4 = vcmp.gt.f32.partialorder %v428_v51, 0.0  ;;  %v517_v55 = vmul.f32 0.01, %v428_v51  ;;  %v542_v56 = vsel %vm490_vm1, %v426_v46, %v516_v50  ;;  %v432_v63 = vadd.f32 %v431_v53, %v1463_v39 }
  0xdf   : > { %v433_v57 = vpop.f32.mrf.mxu0  ;;  %v566_v3 = vpack.c.bf16 %v542_v56, %v540_v62  ;;  %v1480_v6 = vpop.f32.mrf.mxu1  ;;  %v531_v56 = vmul.f32 0.01, %v464_v40  ;;  %v533_v48 = vmul.f32 0.01, %v468_v41  ;;  %vm507_vm0 = vcmp.gt.f32.partialorder %v468_v41, 0.0 }
  0xe0   : > { %v434_v59 = vadd.f32 %v433_v57, %v1461_v38  ;;  %v543_v61 = vsel %vm491_vm4, %v428_v51, %v517_v55  ;;  %v518_v10 = vmul.f32 0.01, %v432_v63  ;;  %vm492_vm7 = vcmp.gt.f32.partialorder %v432_v63, 0.0 }
  0xe1   : > { %v435_v0 = vpop.f32.mrf.mxu0  ;;  %v567_v1 = vpack.c.bf16 %v543_v61, %v541_v60  ;;  %v1483_v12 = vpop.f32.mrf.mxu1  ;;  %v462_v62 = vadd.f32 %v1467_v45, %v1463_v39 }
  0xe2   : > { %v436_v4 = vadd.f32 %v435_v0, %v1463_v39  ;;  %v519_v7 = vmul.f32 0.01, %v434_v59  ;;  %vm493_vm6 = vcmp.gt.f32.partialorder %v434_v59, 0.0  ;;  %v544_v23 = vsel %vm492_vm7, %v432_v63, %v518_v10 }
  0xe3   : > { %v437_v5 = vpop.f32.mrf.mxu0  ;;  %747 = vmatprep.mubr.bf16.mxu1 %v567_v1  ;;  %v477_v16 = vpop.f32.mrf.mxu1  ;;  %v466_v0 = vadd.f32 %v1473_v54, %v1463_v39  ;;  %v474_v1 = vadd.f32 %v1480_v6, %v1461_v38  ;;  %v530_v45 = vmul.f32 0.01, %v462_v62  ;;  %vm504_vm3 = vcmp.gt.f32.partialorder %v462_v62, 0.0 }
  0xe4   : > { %vm494_vm5 = vcmp.gt.f32.partialorder %v436_v4, 0.0  ;;  %v520_v8 = vmul.f32 0.01, %v436_v4  ;;  %v438_v9 = vadd.f32 %v437_v5, %v1461_v38  ;;  %748 = vmatmul.mubr.bf16.vlgmr.msra.gmra.mxu1 %v566_v3  ;;  %v545_v18 = vsel %vm493_vm6, %v434_v59, %v519_v7 }
  0xe5   : > { %v441_v11 = vpop.f32.mrf.mxu0  ;;  %v1487_v24 = vpop.f32.mrf.mxu1  ;;  %v478_v5 = vadd.f32 %v477_v16, %v1461_v38  ;;  %vm506_vm4 = vcmp.gt.f32.partialorder %v466_v0, 0.0  ;;  %v535_v54 = vmul.f32 0.01, %v474_v1  ;;  %v472_v16 = vadd.f32 %v1477_v2, %v1463_v39 }
  0xe6   : > { %vm495_vm8 = vcmp.gt.f32.partialorder %v438_v9, 0.0  ;;  %v521_v13 = vmul.f32 0.01, %v438_v9  ;;  %v546_v15 = vsel %vm494_vm5, %v436_v4, %v520_v8  ;;  %v442_v20 = vadd.f32 %v441_v11, %v1463_v39 }
  0xe7   : > { %v443_v14 = vpop.f32.mrf.mxu0  ;;  %v568_v26 = vpack.c.bf16 %v546_v15, %v544_v23  ;;  %v1490_v28 = vpop.f32.mrf.mxu1  ;;  %v557_v4 = vsel %vm505_vm13, %v464_v40, %v531_v56  ;;  %vm509_vm5 = vcmp.gt.f32.partialorder %v474_v1, 0.0  ;;  %vm511_vm6 = vcmp.gt.f32.partialorder %v478_v5, 0.0 }
  0xe8   : > { %v444_v17 = vadd.f32 %v443_v14, %v1461_v38  ;;  %v547_v19 = vsel %vm495_vm8, %v438_v9, %v521_v13  ;;  %v522_v33 = vmul.f32 0.01, %v442_v20  ;;  %vm496_vm11 = vcmp.gt.f32.partialorder %v442_v20, 0.0 }
  0xe9   : > { %v445_v21 = vpop.f32.mrf.mxu0  ;;  %v569_v22 = vpack.c.bf16 %v547_v19, %v545_v18  ;;  %v485_v35 = vpop.f32.mrf.mxu1  ;;  %v559_v9 = vsel %vm507_vm0, %v468_v41, %v533_v48  ;;  %v532_v14 = vmul.f32 0.01, %v466_v0  ;;  %v484_v6 = vadd.f32 %v1490_v28, %v1461_v38  ;;  %v1536_v41 = vld [vmem:[%s1605_s4] ss:$0 sm:$0xff] }
  0xea   : > { %v446_v25 = vadd.f32 %v445_v21, %v1463_v39  ;;  %v523_v30 = vmul.f32 0.01, %v444_v17  ;;  %vm497_vm10 = vcmp.gt.f32.partialorder %v444_v17, 0.0  ;;  %v548_v52 = vsel %vm496_vm11, %v442_v20, %v522_v33 }
  0xeb   : > { %v447_v27 = vpop.f32.mrf.mxu0  ;;  %755 = vmatprep.mubr.bf16.mxu1 %v569_v22  ;;  %v486_v43 = vpop.f32.mrf.mxu1  ;;  %v575_v15 = vpack.c.bf16 %v559_v9, %v557_v4  ;;  %v476_v18 = vadd.f32 %v1483_v12, %v1463_v39  ;;  %v556_v19 = vsel %vm504_vm3, %v462_v62, %v530_v45  ;;  %v558_v20 = vsel %vm506_vm4, %v466_v0, %v532_v14 }
  0xec   : > { %vm498_vm9 = vcmp.gt.f32.partialorder %v446_v25, 0.0  ;;  %v524_v31 = vmul.f32 0.01, %v446_v25  ;;  %v448_v32 = vadd.f32 %v447_v27, %v1461_v38  ;;  %756 = vmatmul.mubr.bf16.gmra.mxu1 %v568_v26  ;;  %v549_v46 = vsel %vm497_vm10, %v444_v17, %v523_v30 }
  0xed   : > { %v451_v34 = vpop.f32.mrf.mxu0  ;;  %v537_v17 = vmul.f32 0.01, %v478_v5  ;;  %v561_v21 = vsel %vm509_vm5, %v474_v1, %v535_v54  ;;  %v574_v23 = vpack.c.bf16 %v558_v20, %v556_v19  ;;  %v534_v26 = vmul.f32 0.01, %v472_v16 }
  0xee   : > { %vm499_vm12 = vcmp.gt.f32.partialorder %v448_v32, 0.0  ;;  %v525_v36 = vmul.f32 0.01, %v448_v32  ;;  %v550_v42 = vsel %vm498_vm9, %v446_v25, %v524_v31  ;;  %v452_v49 = vadd.f32 %v451_v34, %v1463_v39 }
  0xef   : > { %v453_v37 = vpop.f32.mrf.mxu0  ;;  %v570_v55 = vpack.c.bf16 %v550_v42, %v548_v52  ;;  %v563_v22 = vsel %vm511_vm6, %v478_v5, %v537_v17  ;;  %v539_v25 = vmul.f32 0.01, %v484_v6  ;;  %v536_v27 = vmul.f32 0.01, %v476_v18 }
  0xf0   : > { %v454_v44 = vadd.f32 %v453_v37, %v1461_v38  ;;  %v551_v47 = vsel %vm499_vm12, %v448_v32, %v525_v36  ;;  %v526_v61 = vmul.f32 0.01, %v452_v49  ;;  %vm500_vm1 = vcmp.gt.f32.partialorder %v452_v49, 0.0  ;;  %v1296_v36 = vld [vmem:[%s1606_s5 + $0x18] sm:$0xff]   ;;  %v1299_v37 = vld [vmem:[%s1606_s5] sm:$0xff]  }
  0xf1   : > { %v455_v50 = vpop.f32.mrf.mxu0  ;;  %v571_v51 = vpack.c.bf16 %v551_v47, %v549_v46  ;;  %v577_v30 = vpack.c.bf16 %v563_v22, %v561_v21  ;;  %vm513_vm7 = vcmp.gt.f32.partialorder %v484_v6, 0.0  ;;  %vm508_vm8 = vcmp.gt.f32.partialorder %v472_v16, 0.0  ;;  %1213 = vmatpush3.bf16.msra.mxu0 %v1296_v36 }
  0xf2   : > { %v456_v53 = vadd.f32 %v455_v50, %v1463_v39  ;;  %v527_v58 = vmul.f32 0.01, %v454_v44  ;;  %vm501_vm15 = vcmp.gt.f32.partialorder %v454_v44, 0.0  ;;  %v552_v11 = vsel %vm500_vm1, %v452_v49, %v526_v61  ;;  %1214 = vmatprep.subr.bf16.mxu0 %v1309_v29 }
  0xf3   : > { %v457_v57 = vpop.f32.mrf.mxu0  ;;  %763 = vmatprep.mubr.bf16.mxu1 %v571_v51  ;;  %vm510_vm9 = vcmp.gt.f32.partialorder %v476_v18, 0.0  ;;  %v565_v2 = vsel %vm513_vm7, %v484_v6, %v539_v25  ;;  %v560_v28 = vsel %vm508_vm8, %v472_v16, %v534_v26  ;;  %vm1310_vm11 = vmmov 0  }
  0xf4   : > { %vm502_vm14 = vcmp.gt.f32.partialorder %v456_v53, 0.0  ;;  %v528_v59 = vmul.f32 0.01, %v456_v53  ;;  %v458_v60 = vadd.f32 %v457_v57, %v1461_v38  ;;  %764 = vmatmul.mubr.bf16.gmra.mxu1 %v570_v55  ;;  %v553_v7 = vsel %vm501_vm15, %v454_v44, %v527_v58  ;;  %1220 = vmatprep.mubr.msk.bf16.mxu0 %vm1310_vm11, %v1309_v29 }
  0xf5   : > { %v482_v38 = vadd.f32 %v1487_v24, %v1463_v39  ;;  %v562_v12 = vsel %vm510_vm9, %v476_v18, %v536_v27  ;;  %v579_v32 = vpack.c.bf16 %v565_v2, %v565_v2  ;;  %v1297_v39 = vld [vmem:[%s1606_s5 + $0x10] sm:$0xff]   ;;  %v1298_v24 = vld [vmem:[%s1606_s5 + $0x8] sm:$0xff]   ;;  %vm1008_vm9 = vcmask 31744  }
  0xf6   : > { %vm503_vm2 = vcmp.gt.f32.partialorder %v458_v60, 0.0  ;;  %v529_v63 = vmul.f32 0.01, %v458_v60  ;;  %v554_v3 = vsel %vm502_vm14, %v456_v53, %v528_v59  ;;  %v576_v33 = vpack.c.bf16 %v562_v12, %v560_v28  ;;  %1215 = vmatpush3.bf16.msra.mxu0 %v1297_v39 }
  0xf7   : > { %v572_v13 = vpack.c.bf16 %v554_v3, %v552_v11  ;;  %v538_v31 = vmul.f32 0.01, %v482_v38  ;;  %vm512_vm10 = vcmp.gt.f32.partialorder %v482_v38, 0.0  ;;  %1216 = vmatprep.subr.bf16.mxu0 %v1309_v29 }
  0xf8   : > { %v555_v8 = vsel %vm503_vm2, %v458_v60, %v529_v63 }
  0xf9   : > { %v573_v10 = vpack.c.bf16 %v555_v8, %v553_v7  ;;  %v564_v34 = vsel %vm512_vm10, %v482_v38, %v538_v31 }
  0xfa   : > { %v578_v35 = vpack.c.bf16 %v564_v34, %v564_v34  ;;  %1217 = vmatpush3.bf16.msra.mxu0 %v1298_v24 }
  0xfb   : > { %771 = vmatprep.mubr.bf16.mxu1 %v573_v10  ;;  %1218 = vmatprep.subr.bf16.mxu0 %v1309_v29 }
  0xfc   : > { %772 = vmatmul.mubr.bf16.gmra.mxu1 %v572_v13 }
  0xfd   : > { %779 = vmatprep.mubr.bf16.mxu1 %v575_v15 }
  0xfe   : > { %1219 = vmatpush3.bf16.msra.mxu0 %v1299_v37 }
 0x104   : > { %780 = vmatmul.mubr.bf16.gmra.mxu1 %v574_v23 }
 0x105   : > { %787 = vmatprep.mubr.bf16.mxu1 %v577_v30 }
 0x10c   : > { %788 = vmatmul.mubr.bf16.gmra.mxu1 %v576_v33 }
 0x10d   : > { %795 = vmatprep.mubr.bf16.mxu1 %v579_v32 }
 0x114   : > { %796 = vmatmul.mubr.bf16.gmra.mxu1 %v578_v35 }
 0x1a4   : > { %v1147_v40 = vpop.f32.mrf.mxu1 }
 0x1a6   : > { %v1148_v42 = vpop.f32.mrf.mxu1 }
 0x1a7   : > { %v1149_v43 = vadd.f32 %v1148_v42, %v1147_v40 }
 0x1a8   : > { %v1150_v44 = vpop.f32.mrf.mxu1 }
 0x1a9   : > { %v750_v46 = vadd.f32 %v1149_v43, %v1536_v41 }
 0x1aa   : > { %v1151_v47 = vpop.f32.mrf.mxu1 }
 0x1ab   : > { %v1152_v49 = vadd.f32 %v1151_v47, %v1150_v44  ;;  %v816_v51 = vmul.f32 0.01, %v750_v46  ;;  %vm803_vm12 = vcmp.gt.f32.partialorder %v750_v46, 0.0 }
 0x1ac   : > { %v1153_v50 = vpop.f32.mrf.mxu1 }
 0x1ad   : > { %v753_v52 = vadd.f32 %v1152_v49, %v1536_v41  ;;  %v829_v48 = vsel %vm803_vm12, %v750_v46, %v816_v51 }
 0x1ae   : > { %v1154_v53 = vpop.f32.mrf.mxu1 }
 0x1af   : > { %vm804_vm13 = vcmp.gt.f32.partialorder %v753_v52, 0.0  ;;  %v817_v55 = vmul.f32 0.01, %v753_v52  ;;  %v1155_v56 = vadd.f32 %v1154_v53, %v1153_v50 }
 0x1b0   : > { %v1156_v57 = vpop.f32.mrf.mxu1 }
 0x1b1   : > { %v830_v58 = vsel %vm804_vm13, %v753_v52, %v817_v55  ;;  %v758_v59 = vadd.f32 %v1155_v56, %v1536_v41 }
 0x1b2   : > { %v842_v60 = vpack.c.bf16 %v830_v58, %v829_v48  ;;  %v1157_v61 = vpop.f32.mrf.mxu1 }
 0x1b3   : > { %v1158_v62 = vadd.f32 %v1157_v61, %v1156_v57  ;;  %v818_v0 = vmul.f32 0.01, %v758_v59  ;;  %vm805_vm14 = vcmp.gt.f32.partialorder %v758_v59, 0.0 }
 0x1b4   : > { %v1159_v63 = vpop.f32.mrf.mxu1  ;;  %1221 = vmatmul.mubr.bf16.vlgmr.msra.gmra.mxu0 %v842_v60 }
 0x1b5   : > { %v761_v1 = vadd.f32 %v1158_v62, %v1536_v41  ;;  %1224 = vmatprep.mubr.msk.bf16.mxu0 %vm1310_vm11, %v1309_v29  ;;  %v831_v9 = vsel %vm805_vm14, %v758_v59, %v818_v0 }
 0x1b6   : > { %v1160_v3 = vpop.f32.mrf.mxu1 }
 0x1b7   : > { %vm806_vm15 = vcmp.gt.f32.partialorder %v761_v1, 0.0  ;;  %v819_v4 = vmul.f32 0.01, %v761_v1  ;;  %v1161_v5 = vadd.f32 %v1160_v3, %v1159_v63 }
 0x1b8   : > { %v1162_v7 = vpop.f32.mrf.mxu1 }
 0x1b9   : > { %v766_v8 = vadd.f32 %v1161_v5, %v1536_v41  ;;  %v832_v10 = vsel %vm806_vm15, %v761_v1, %v819_v4  ;;  %v1120_v5 = vld [vmem:[%s1607_s6] ss:$0 sm:$0xff] }
 0x1ba   : > { %v1163_v11 = vpop.f32.mrf.mxu1  ;;  %v843_v13 = vpack.c.bf16 %v832_v10, %v831_v9 }
 0x1bb   : > { %v1164_v45 = vadd.f32 %v1163_v11, %v1162_v7  ;;  %v820_v15 = vmul.f32 0.01, %v766_v8  ;;  %vm807_vm0 = vcmp.gt.f32.partialorder %v766_v8, 0.0 }
 0x1bc   : > { %v1165_v14 = vpop.f32.mrf.mxu1  ;;  %1225 = vmatmul.mubr.bf16.gmra.mxu0 %v843_v13 }
 0x1bd   : > { %v769_v54 = vadd.f32 %v1164_v45, %v1536_v41  ;;  %1228 = vmatprep.mubr.msk.bf16.mxu0 %vm1310_vm11, %v1309_v29  ;;  %v833_v20 = vsel %vm807_vm0, %v766_v8, %v820_v15 }
 0x1be   : > { %v1166_v17 = vpop.f32.mrf.mxu1 }
 0x1bf   : > { %vm808_vm1 = vcmp.gt.f32.partialorder %v769_v54, 0.0  ;;  %v821_v6 = vmul.f32 0.01, %v769_v54  ;;  %v1167_v16 = vadd.f32 %v1166_v17, %v1165_v14 }
 0x1c0   : > { %v1168_v18 = vpop.f32.mrf.mxu1 }
 0x1c1   : > { %v774_v19 = vadd.f32 %v1167_v16, %v1536_v41  ;;  %v834_v21 = vsel %vm808_vm1, %v769_v54, %v821_v6 }
 0x1c2   : > { %v1169_v22 = vpop.f32.mrf.mxu1  ;;  %v844_v23 = vpack.c.bf16 %v834_v21, %v833_v20 }
 0x1c3   : > { %v1170_v25 = vadd.f32 %v1169_v22, %v1168_v18  ;;  %v822_v27 = vmul.f32 0.01, %v774_v19  ;;  %vm809_vm2 = vcmp.gt.f32.partialorder %v774_v19, 0.0 }
 0x1c4   : > { %v1171_v26 = vpop.f32.mrf.mxu1  ;;  %1229 = vmatmul.mubr.bf16.gmra.mxu0 %v844_v23 }
 0x1c5   : > { %v777_v30 = vadd.f32 %v1170_v25, %v1536_v41  ;;  %1232 = vmatprep.mubr.msk.bf16.mxu0 %vm1310_vm11, %v1309_v29  ;;  %v835_v32 = vsel %vm809_vm2, %v774_v19, %v822_v27 }
 0x1c6   : > { %v1172_v38 = vpop.f32.mrf.mxu1 }
 0x1c7   : > { %vm810_vm3 = vcmp.gt.f32.partialorder %v777_v30, 0.0  ;;  %v823_v2 = vmul.f32 0.01, %v777_v30  ;;  %v1173_v28 = vadd.f32 %v1172_v38, %v1171_v26 }
 0x1c8   : > { %v1174_v12 = vpop.f32.mrf.mxu1 }
 0x1c9   : > { %v782_v31 = vadd.f32 %v1173_v28, %v1536_v41  ;;  %v836_v33 = vsel %vm810_vm3, %v777_v30, %v823_v2 }
 0x1ca   : > { %v1175_v34 = vpop.f32.mrf.mxu1  ;;  %v845_v35 = vpack.c.bf16 %v836_v33, %v835_v32 }
 0x1cb   : > { %v1176_v36 = vadd.f32 %v1175_v34, %v1174_v12  ;;  %v824_v24 = vmul.f32 0.01, %v782_v31  ;;  %vm811_vm4 = vcmp.gt.f32.partialorder %v782_v31, 0.0 }
 0x1cc   : > { %v1177_v39 = vpop.f32.mrf.mxu1  ;;  %1233 = vmatmul.mubr.bf16.gmra.mxu0 %v845_v35 }
 0x1cd   : > { %v785_v37 = vadd.f32 %v1176_v36, %v1536_v41  ;;  %1236 = vmatprep.mubr.msk.bf16.mxu0 %vm1310_vm11, %v1309_v29  ;;  %v837_v47 = vsel %vm811_vm4, %v782_v31, %v824_v24 }
 0x1ce   : > { %v1178_v40 = vpop.f32.mrf.mxu1 }
 0x1cf   : > { %vm812_vm5 = vcmp.gt.f32.partialorder %v785_v37, 0.0  ;;  %v825_v42 = vmul.f32 0.01, %v785_v37  ;;  %v1179_v43 = vadd.f32 %v1178_v40, %v1177_v39 }
 0x1d0   : > { %v1180_v44 = vpop.f32.mrf.mxu1 }
 0x1d1   : > { %v790_v46 = vadd.f32 %v1179_v43, %v1536_v41  ;;  %v838_v49 = vsel %vm812_vm5, %v785_v37, %v825_v42 }
 0x1d2   : > { %v1181_v50 = vpop.f32.mrf.mxu1  ;;  %v846_v51 = vpack.c.bf16 %v838_v49, %v837_v47 }
 0x1d3   : > { %v1182_v52 = vadd.f32 %v1181_v50, %v1180_v44  ;;  %v826_v55 = vmul.f32 0.01, %v790_v46  ;;  %vm813_vm6 = vcmp.gt.f32.partialorder %v790_v46, 0.0 }
 0x1d4   : > { %v1183_v53 = vpop.f32.mrf.mxu1  ;;  %1237 = vmatmul.mubr.bf16.gmra.mxu0 %v846_v51 }
 0x1d5   : > { %v793_v56 = vadd.f32 %v1182_v52, %v1536_v41  ;;  %1240 = vmatprep.mubr.msk.bf16.mxu0 %vm1310_vm11, %v1309_v29  ;;  %v839_v61 = vsel %vm813_vm6, %v790_v46, %v826_v55 }
 0x1d6   : > { %v1184_v57 = vpop.f32.mrf.mxu1 }
 0x1d7   : > { %vm814_vm7 = vcmp.gt.f32.partialorder %v793_v56, 0.0  ;;  %v827_v48 = vmul.f32 0.01, %v793_v56  ;;  %v1185_v58 = vadd.f32 %v1184_v57, %v1183_v53 }
 0x1d8   : > { %v1186_v59 = vpop.f32.mrf.mxu1 }
 0x1d9   : > { %v798_v60 = vadd.f32 %v1185_v58, %v1536_v41  ;;  %v840_v62 = vsel %vm814_vm7, %v793_v56, %v827_v48 }
 0x1da   : > { %v1187_v63 = vpop.f32.mrf.mxu1  ;;  %v847_v0 = vpack.c.bf16 %v840_v62, %v839_v61 }
 0x1db   : > { %v828_v1 = vmul.f32 0.01, %v798_v60  ;;  %vm815_vm8 = vcmp.gt.f32.partialorder %v798_v60, 0.0 }
 0x1dc   : > { %1241 = vmatmul.mubr.bf16.gmra.mxu0 %v847_v0 }
 0x1dd   : > { %1244 = vmatprep.mubr.msk.bf16.mxu0 %vm1310_vm11, %v1309_v29  ;;  %v841_v3 = vsel %vm815_vm8, %v798_v60, %v828_v1 }
 0x1de   : > { %v848_v4 = vpack.c.bf16 %v841_v3, %v841_v3 }
 0x1e4   : > { %1245 = vmatmul.mubr.bf16.gmra.mxu0 %v848_v4 }
 0x274   : > { %v954_v41 = vpop.f32.mrf.mxu0 }
 0x275   : > { %v955_v29 = vadd.f32 %v1120_v5, %v954_v41 }
 0x276   : > { %v1222_v7 = vpop.f32.mrf.mxu0 }
 0x277   : > { %1009 = vst.msk [vmem:[%s1570_s10] sm:$0xff] %vm1008_vm9, %v955_v29 }
 0x278   : > { %v957_v8 = vpop.f32.mrf.mxu0 }
 0x279   : > { %v958_v9 = vadd.f32 %v1120_v5, %v957_v8 }
 0x27a   : > { %v1223_v10 = vpop.f32.mrf.mxu0 }
 0x27b   : > { %1010 = vst.msk [vmem:[%s1570_s10 + $0x8] sm:$0xff] %vm1008_vm9, %v958_v9 }
 0x27c   : > { %v962_v11 = vpop.f32.mrf.mxu0 }
 0x27d   : > { %v963_v13 = vadd.f32 %v1120_v5, %v962_v11 }
 0x27e   : > { %v1226_v45 = vpop.f32.mrf.mxu0 }
 0x27f   : > { %1011 = vst.msk [vmem:[%s1570_s10 + $0x10] sm:$0xff] %vm1008_vm9, %v963_v13 }
 0x280   : > { %v965_v14 = vpop.f32.mrf.mxu0 }
 0x281   : > { %v966_v15 = vadd.f32 %v1120_v5, %v965_v14 }
 0x282   : > { %v1227_v54 = vpop.f32.mrf.mxu0 }
 0x283   : > { %1012 = vst.msk [vmem:[%s1570_s10 + $0x18] sm:$0xff] %vm1008_vm9, %v966_v15 }
 0x284   : > { %v970_v17 = vpop.f32.mrf.mxu0 }
 0x285   : > { %v971_v6 = vadd.f32 %v1120_v5, %v970_v17 }
 0x286   : > { %v1230_v16 = vpop.f32.mrf.mxu0 }
 0x287   : > { %1013 = vst.msk [vmem:[%s1570_s10 + $0x20] sm:$0xff] %vm1008_vm9, %v971_v6 }
 0x288   : > { %v973_v18 = vpop.f32.mrf.mxu0 }
 0x289   : > { %v974_v19 = vadd.f32 %v1120_v5, %v973_v18 }
 0x28a   : > { %v1231_v20 = vpop.f32.mrf.mxu0 }
 0x28b   : > { %1014 = vst.msk [vmem:[%s1570_s10 + $0x28] sm:$0xff] %vm1008_vm9, %v974_v19 }
 0x28c   : > { %v978_v21 = vpop.f32.mrf.mxu0 }
 0x28d   : > { %v979_v22 = vadd.f32 %v1120_v5, %v978_v21 }
 0x28e   : > { %v1234_v23 = vpop.f32.mrf.mxu0 }
 0x28f   : > { %1015 = vst.msk [vmem:[%s1570_s10 + $0x30] sm:$0xff] %vm1008_vm9, %v979_v22 }
 0x290   : > { %v981_v25 = vpop.f32.mrf.mxu0 }
 0x291   : > { %v982_v26 = vadd.f32 %v1120_v5, %v981_v25 }
 0x292   : > { %v1235_v27 = vpop.f32.mrf.mxu0 }
 0x293   : > { %1016 = vst.msk [vmem:[%s1570_s10 + $0x38] sm:$0xff] %vm1008_vm9, %v982_v26 }
 0x294   : > { %v986_v30 = vpop.f32.mrf.mxu0 }
 0x295   : > { %v987_v38 = vadd.f32 %v1120_v5, %v986_v30 }
 0x296   : > { %v1238_v2 = vpop.f32.mrf.mxu0 }
 0x297   : > { %1017 = vst.msk [vmem:[%s1570_s10 + $0x40] sm:$0xff] %vm1008_vm9, %v987_v38 }
 0x298   : > { %v989_v28 = vpop.f32.mrf.mxu0 }
 0x299   : > { %v990_v12 = vadd.f32 %v1120_v5, %v989_v28 }
 0x29a   : > { %v1239_v31 = vpop.f32.mrf.mxu0 }
 0x29b   : > { %1018 = vst.msk [vmem:[%s1570_s10 + $0x48] sm:$0xff] %vm1008_vm9, %v990_v12 }
 0x29c   : > { %v994_v32 = vpop.f32.mrf.mxu0 }
 0x29d   : > { %v995_v33 = vadd.f32 %v1120_v5, %v994_v32 }
 0x29e   : > { %v1242_v34 = vpop.f32.mrf.mxu0 }
 0x29f   : > { %1019 = vst.msk [vmem:[%s1570_s10 + $0x50] sm:$0xff] %vm1008_vm9, %v995_v33 }
 0x2a0   : > { %v997_v35 = vpop.f32.mrf.mxu0 }
 0x2a1   : > { %v998_v36 = vadd.f32 %v1120_v5, %v997_v35 }
 0x2a2   : > { %v1243_v39 = vpop.f32.mrf.mxu0 }
 0x2a3   : > { %1020 = vst.msk [vmem:[%s1570_s10 + $0x58] sm:$0xff] %vm1008_vm9, %v998_v36 }
 0x2a4   : > { %v1002_v24 = vpop.f32.mrf.mxu0 }
 0x2a5   : > { %v1003_v37 = vadd.f32 %v1120_v5, %v1002_v24 }
 0x2a6   : > { %v1246_v40 = vpop.f32.mrf.mxu0 }
 0x2a7   : > { %1021 = vst.msk [vmem:[%s1570_s10 + $0x60] sm:$0xff] %vm1008_vm9, %v1003_v37 }
 0x2a8   : > { %v1005_v42 = vpop.f32.mrf.mxu0 }
 0x2aa   : > { %v1247_v43 = vpop.f32.mrf.mxu0 }
 0x2ab PF: > { %s17_s24 = sadd.s32 1, %s1306_s24  }
 0x2ac   : > { %p14_p4 = scmp.ge.s32.totalorder %s17_s24, 4  }
 0x2ae   :  { %16 = sbr.rel (!%p14_p4) target bundleno = 1 (0x1), region = 78 }

</bundles_post_ra>
